<compile_context>
chip_gen: v5e
topology: v5e:2x2
jax: 0.10.0
libtpu: 0.0.40
codegen_flags: <defaults>
</compile_context>

<pallas_src>
import functools

import jax
import jax.numpy as jnp
from jax.experimental import pallas as pl
from jax.experimental.pallas import tpu as pltpu

_EPS = 1e-6  # PyTorch F.pairwise_distance default eps (added to the difference)


def _round_up(x, m):
    return ((x + m - 1) // m) * m


def _vmem_limit_bytes():
    """VMEM limit handed to Mosaic: ~25% headroom under physical capacity.

    Capped so a size tuned on 128 MiB parts (v5e/v6e) never OOMs v7x's 64 MiB.
    """
    phys = 64 * 1024 * 1024  # conservative fallback == v7x physical
    try:
        phys = int(pltpu.get_tpu_info().vmem_capacity_bytes)
    except Exception:
        pass
    return int(min(phys * 3 // 4, 96 * 1024 * 1024))


def _choose_row_tile(rows, row_bytes, tile_budget,
                     target_block_bytes=2 * 1024 * 1024):
    """Row tile targeting ~2 MiB of HBM per input block, VMEM-capped.

    3 inputs x 2 pipeline buffers must fit `tile_budget`. Also prefers >= 2 row
    tiles so the "parallel" batch axis can shard across v7x's two TensorCores.
    """
    tb = max(8, (target_block_bytes // row_bytes // 8) * 8)
    tb_vmem = max(8, (tile_budget // (6 * row_bytes) // 8) * 8)
    tb = min(tb, tb_vmem, _round_up(rows, 8))
    if rows > 8 and tb >= _round_up(rows, 8):
        # Whole batch fit in one tile: split in two for v7x megacore sharding.
        tb = max(8, _round_up(-(-rows // 2), 8))
    return tb


def _triplet_fold_kernel(a_ref, p_ref, n_ref, out_ref, *, margin, true_b, tb, d, r):
    """Lane-dense folded path: inputs are the (B//r, r*d == 128) view."""
    i = pl.program_id(0)

    a = a_ref[...]
    dp = (a - p_ref[...]).astype(jnp.float32) + _EPS
    dn = (a - n_ref[...]).astype(jnp.float32) + _EPS

    # Global *physical* row index of each sublane row in this tile.
    row = jax.lax.broadcasted_iota(jnp.int32, (tb, 1), 0) + i * tb

    partial = jnp.float32(0.0)
    # Static unroll over the r logical rows folded into each physical row.
    for k in range(r):
        dpk = dp[:, k * d:(k + 1) * d]
        dnk = dn[:, k * d:(k + 1) * d]
        pos = jnp.sqrt(jnp.sum(dpk * dpk, axis=-1, keepdims=True))  # (tb, 1)
        neg = jnp.sqrt(jnp.sum(dnk * dnk, axis=-1, keepdims=True))  # (tb, 1)
        hinge = jnp.maximum(pos - neg + margin, 0.0)
        # Logical (unfolded) row; masks both the ragged tail of the last row
        # tile and any padding rows (garbage/NaN) before the sum.
        lrow = row * r + k
        hinge = jnp.where(lrow < true_b, hinge, 0.0)
        partial = partial + jnp.sum(hinge)

    # One lane-dense vreg row per tile; wrapper reads element [tile, 0, 0].
    out_ref[...] = jnp.full(out_ref.shape, partial, dtype=jnp.float32)


def _triplet_rowcol_kernel(a_ref, p_ref, n_ref, out_ref, pos_acc, neg_acc,
                           *, margin, true_b, tb, true_d, td):
    """General path: row tiles x (optional) feature tiles with f32 accumulators."""
    i = pl.program_id(0)
    d = pl.program_id(1)

    @pl.when(d == 0)
    def _():
        pos_acc[...] = jnp.zeros_like(pos_acc)
        neg_acc[...] = jnp.zeros_like(neg_acc)

    a = a_ref[...]
    dp = (a - p_ref[...]).astype(jnp.float32) + _EPS
    dn = (a - n_ref[...]).astype(jnp.float32) + _EPS
    sq_p = dp * dp
    sq_n = dn * dn

    if true_d % td != 0:
        # Ragged last feature block: drop out-of-range lanes (unspecified data).
        col = jax.lax.broadcasted_iota(jnp.int32, (tb, td), 1) + d * td
        keep = col < true_d
        sq_p = jnp.where(keep, sq_p, 0.0)
        sq_n = jnp.where(keep, sq_n, 0.0)

    pos_acc[...] += jnp.sum(sq_p, axis=-1, keepdims=True)
    neg_acc[...] += jnp.sum(sq_n, axis=-1, keepdims=True)

    @pl.when(d == pl.num_programs(1) - 1)
    def _():
        hinge = jnp.maximum(
            jnp.sqrt(pos_acc[...]) - jnp.sqrt(neg_acc[...]) + margin, 0.0)
        row = jax.lax.broadcasted_iota(jnp.int32, (tb, 1), 0) + i * tb
        hinge = jnp.where(row < true_b, hinge, 0.0)  # ragged / garbage rows
        out_ref[...] = jnp.full(out_ref.shape, jnp.sum(hinge), dtype=jnp.float32)


def triplet_loss(anchor, positive, negative, margin=1.0):
    """Pallas TPU triplet loss. anchor/positive/negative: (B, D) arrays."""
    assert anchor.shape == positive.shape == negative.shape
    assert anchor.ndim == 2
    B, D = anchor.shape
    itemsize = jnp.dtype(anchor.dtype).itemsize

    vmem_limit = _vmem_limit_bytes()
    tile_budget = (vmem_limit * 3) // 4  # headroom for scratch/partials

    # Lane-dense fold for small power-of-two feature dims (8/16/32/64).
    r = 128 // D if 0 < D < 128 else 1
    use_fold = (r > 1) and (D >= 8) and (128 % D == 0) and (B % r == 0)

    if use_fold:
        rows = B // r
        td = r * D  # == 128
        # Contiguous row-major reshape: a free view, not an extra HBM pass.
        anchor = anchor.reshape(rows, td)
        positive = positive.reshape(rows, td)
        negative = negative.reshape(rows, td)
    else:
        rows = B
        if 6 * 8 * D * itemsize <= tile_budget:
            td = D
        else:
            # Huge D: tile the feature axis (second, "arbitrary" grid axis) so a
            # >=256-row tile still fits VMEM on every generation (v7x: 64 MiB).
            td = max(128, (tile_budget // (6 * 256 * itemsize) // 128) * 128)

    tb = _choose_row_tile(rows, td * itemsize, tile_budget)
    num_row_tiles = -(-rows // tb)

    cost = pl.CostEstimate(
        flops=10 * B * D,
        transcendentals=2 * B,
        bytes_accessed=3 * B * D * itemsize + num_row_tiles * 512,
    )

    if use_fold:
        kernel = functools.partial(
            _triplet_fold_kernel, margin=float(margin), true_b=B, tb=tb, d=D, r=r)
        partials = pl.pallas_call(
            kernel,
            out_shape=jax.ShapeDtypeStruct((num_row_tiles, 1, 128), jnp.float32),
            grid=(num_row_tiles,),
            in_specs=[pl.BlockSpec((tb, td), lambda i: (i, 0))] * 3,
            out_specs=pl.BlockSpec((1, 1, 128), lambda i: (i, 0, 0)),
            compiler_params=pltpu.CompilerParams(
                dimension_semantics=("parallel",),
                vmem_limit_bytes=vmem_limit,
            ),
            cost_estimate=cost,
        )(anchor, positive, negative)
    else:
        num_d_tiles = -(-D // td)
        kernel = functools.partial(
            _triplet_rowcol_kernel, margin=float(margin), true_b=B, tb=tb,
            true_d=D, td=td)
        partials = pl.pallas_call(
            kernel,
            out_shape=jax.ShapeDtypeStruct((num_row_tiles, 1, 128), jnp.float32),
            grid=(num_row_tiles, num_d_tiles),
            in_specs=[pl.BlockSpec((tb, td), lambda i, d: (i, d))] * 3,
            out_specs=pl.BlockSpec((1, 1, 128), lambda i, d: (i, 0, 0)),
            scratch_shapes=[pltpu.VMEM((tb, 1), jnp.float32),
                            pltpu.VMEM((tb, 1), jnp.float32)],
            compiler_params=pltpu.CompilerParams(
                dimension_semantics=("parallel", "arbitrary"),
                vmem_limit_bytes=vmem_limit,
            ),
            cost_estimate=cost,
        )(anchor, positive, negative)

    # Tiny final reduction over per-tile partials; divide by the true batch size.
    return jnp.sum(partials[:, 0, 0]) / B


def triplet_loss_ref(anchor, positive, negative, margin=1.0):
    """Pure-JAX reference for verification."""
    pd = jnp.sqrt(jnp.sum((anchor - positive + _EPS) ** 2, axis=-1))
    nd = jnp.sqrt(jnp.sum((anchor - negative + _EPS) ** 2, axis=-1))
    return jnp.mean(jnp.maximum(pd - nd + margin, 0.0))


if __name__ == "__main__":
    # TripletLoss has no learnable parameters (only margin=1.0).
    key = jax.random.PRNGKey(0)
    ks = jax.random.split(key, 6)

    # Case 1: small embedding (exercises the lane-dense fold path).
    B, D = 8, 32
    anchor = jax.random.normal(ks[0], (B, D), dtype=jnp.float32)
    positive = jax.random.normal(ks[1], (B, D), dtype=jnp.float32)
    negative = jax.random.normal(ks[2], (B, D), dtype=jnp.float32)
    loss = triplet_loss(anchor, positive, negative, margin=1.0)
    jax.block_until_ready(loss)
    ref = triplet_loss_ref(anchor, positive, negative, margin=1.0)
    assert jnp.allclose(loss, ref, atol=1e-5, rtol=1e-5), (loss, ref)

    # Case 2: ragged batch + non-power-of-two feature dim (general path, masks).
    B2, D2 = 5, 40
    a2 = jax.random.normal(ks[3], (B2, D2), dtype=jnp.float32)
    p2 = jax.random.normal(ks[4], (B2, D2), dtype=jnp.float32)
    n2 = jax.random.normal(ks[5], (B2, D2), dtype=jnp.float32)
    loss2 = triplet_loss(a2, p2, n2, margin=1.0)
    jax.block_until_ready(loss2)
    ref2 = triplet_loss_ref(a2, p2, n2, margin=1.0)
    assert jnp.allclose(loss2, ref2, atol=1e-5, rtol=1e-5), (loss2, ref2)

    print("KERNEL_OK")
</pallas_src>

<mosaic_0001>
module attributes {stable_mosaic.version = 11 : i64} {
  func.func @_triplet_fold_kernel(%arg0: i32, %arg1: memref<8x128xf32, #tpu.memory_space<vmem>>, %arg2: memref<8x128xf32, #tpu.memory_space<vmem>>, %arg3: memref<8x128xf32, #tpu.memory_space<vmem>>, %arg4: memref<1x1x128xf32, #tpu.memory_space<vmem>>) attributes {dimension_semantics = [#tpu.dimension_semantics<parallel>], iteration_bounds = array<i64: 1>, scalar_prefetch = 0 : i64, scratch_operands = 0 : i64, tpu.core_type = #tpu.core_type<tc>, window_params = [{transform_indices = @transform_0, window_bounds = array<i64: 8, 128>}, {transform_indices = @transform_1, window_bounds = array<i64: 8, 128>}, {transform_indices = @transform_2, window_bounds = array<i64: 8, 128>}, {transform_indices = @transform_3, window_bounds = array<i64: 1, 1, 128>}]} {
    %c0 = arith.constant 0 : index
    %c0_0 = arith.constant 0 : index
    %0 = vector.load %arg1[%c0, %c0_0] : memref<8x128xf32, #tpu.memory_space<vmem>>, vector<8x128xf32>
    %c0_1 = arith.constant 0 : index
    %c0_2 = arith.constant 0 : index
    %1 = vector.load %arg2[%c0_1, %c0_2] : memref<8x128xf32, #tpu.memory_space<vmem>>, vector<8x128xf32>
    %2 = arith.subf %0, %1 : vector<8x128xf32>
    %cst = arith.constant 9.99999997E-7 : f32
    %3 = vector.broadcast %cst : f32 to vector<8x128xf32>
    %4 = arith.addf %2, %3 : vector<8x128xf32>
    %c0_3 = arith.constant 0 : index
    %c0_4 = arith.constant 0 : index
    %5 = vector.load %arg3[%c0_3, %c0_4] : memref<8x128xf32, #tpu.memory_space<vmem>>, vector<8x128xf32>
    %6 = arith.subf %0, %5 : vector<8x128xf32>
    %cst_5 = arith.constant 9.99999997E-7 : f32
    %7 = vector.broadcast %cst_5 : f32 to vector<8x128xf32>
    %8 = arith.addf %6, %7 : vector<8x128xf32>
    %9 = tpu.iota {dimensions = array<i32: 0>} : vector<8x1xi32>
    %c8_i32 = arith.constant 8 : i32
    %10 = arith.muli %arg0, %c8_i32 : i32
    %11 = vector.broadcast %10 : i32 to vector<8x1xi32>
    %12 = arith.addi %9, %11 : vector<8x1xi32>
    %13 = vector.extract_strided_slice %4 {offsets = [0, 0], sizes = [8, 32], strides = [1, 1]} : vector<8x128xf32> to vector<8x32xf32>
    %14 = vector.extract_strided_slice %8 {offsets = [0, 0], sizes = [8, 32], strides = [1, 1]} : vector<8x128xf32> to vector<8x32xf32>
    %15 = arith.mulf %13, %13 : vector<8x32xf32>
    %cst_6 = arith.constant dense<0.000000e+00> : vector<8xf32>
    %16 = vector.multi_reduction <add>, %15, %cst_6 [1] : vector<8x32xf32> to vector<8xf32>
    %17 = vector.shape_cast %16 : vector<8xf32> to vector<8x1xf32>
    %18 = math.sqrt %17 : vector<8x1xf32>
    %19 = arith.mulf %14, %14 : vector<8x32xf32>
    %cst_7 = arith.constant dense<0.000000e+00> : vector<8xf32>
    %20 = vector.multi_reduction <add>, %19, %cst_7 [1] : vector<8x32xf32> to vector<8xf32>
    %21 = vector.shape_cast %20 : vector<8xf32> to vector<8x1xf32>
    %22 = math.sqrt %21 : vector<8x1xf32>
    %23 = arith.subf %18, %22 : vector<8x1xf32>
    %cst_8 = arith.constant 1.000000e+00 : f32
    %24 = vector.broadcast %cst_8 : f32 to vector<8x1xf32>
    %25 = arith.addf %23, %24 : vector<8x1xf32>
    %cst_9 = arith.constant 0.000000e+00 : f32
    %26 = vector.broadcast %cst_9 : f32 to vector<8x1xf32>
    %27 = arith.maximumf %25, %26 : vector<8x1xf32>
    %c4_i32 = arith.constant 4 : i32
    %28 = vector.broadcast %c4_i32 : i32 to vector<8x1xi32>
    %29 = arith.muli %12, %28 : vector<8x1xi32>
    %c0_i32 = arith.constant 0 : i32
    %30 = vector.broadcast %c0_i32 : i32 to vector<8x1xi32>
    %31 = arith.addi %29, %30 : vector<8x1xi32>
    %c8_i32_10 = arith.constant 8 : i32
    %32 = vector.broadcast %c8_i32_10 : i32 to vector<8x1xi32>
    %33 = arith.cmpi slt, %31, %32 : vector<8x1xi32>
    %cst_11 = arith.constant 0.000000e+00 : f32
    %34 = vector.broadcast %cst_11 : f32 to vector<8x1xf32>
    %35 = arith.select %33, %27, %34 : vector<8x1xi1>, vector<8x1xf32>
    %36 = vector.shape_cast %35 : vector<8x1xf32> to vector<1x8x1xf32>
    %cst_12 = arith.constant dense<0.000000e+00> : vector<1xf32>
    %37 = vector.multi_reduction <add>, %36, %cst_12 [1, 2] : vector<1x8x1xf32> to vector<1xf32>
    %38 = vector.shape_cast %37 : vector<1xf32> to vector<1x1x1xf32>
    %39 = vector.extract %38[0, 0, 0] : f32 from vector<1x1x1xf32>
    %cst_13 = arith.constant 0.000000e+00 : f32
    %40 = arith.addf %cst_13, %39 : f32
    %41 = vector.extract_strided_slice %4 {offsets = [0, 32], sizes = [8, 32], strides = [1, 1]} : vector<8x128xf32> to vector<8x32xf32>
    %42 = vector.extract_strided_slice %8 {offsets = [0, 32], sizes = [8, 32], strides = [1, 1]} : vector<8x128xf32> to vector<8x32xf32>
    %43 = arith.mulf %41, %41 : vector<8x32xf32>
    %cst_14 = arith.constant dense<0.000000e+00> : vector<8xf32>
    %44 = vector.multi_reduction <add>, %43, %cst_14 [1] : vector<8x32xf32> to vector<8xf32>
    %45 = vector.shape_cast %44 : vector<8xf32> to vector<8x1xf32>
    %46 = math.sqrt %45 : vector<8x1xf32>
    %47 = arith.mulf %42, %42 : vector<8x32xf32>
    %cst_15 = arith.constant dense<0.000000e+00> : vector<8xf32>
    %48 = vector.multi_reduction <add>, %47, %cst_15 [1] : vector<8x32xf32> to vector<8xf32>
    %49 = vector.shape_cast %48 : vector<8xf32> to vector<8x1xf32>
    %50 = math.sqrt %49 : vector<8x1xf32>
    %51 = arith.subf %46, %50 : vector<8x1xf32>
    %cst_16 = arith.constant 1.000000e+00 : f32
    %52 = vector.broadcast %cst_16 : f32 to vector<8x1xf32>
    %53 = arith.addf %51, %52 : vector<8x1xf32>
    %cst_17 = arith.constant 0.000000e+00 : f32
    %54 = vector.broadcast %cst_17 : f32 to vector<8x1xf32>
    %55 = arith.maximumf %53, %54 : vector<8x1xf32>
    %c4_i32_18 = arith.constant 4 : i32
    %56 = vector.broadcast %c4_i32_18 : i32 to vector<8x1xi32>
    %57 = arith.muli %12, %56 : vector<8x1xi32>
    %c1_i32 = arith.constant 1 : i32
    %58 = vector.broadcast %c1_i32 : i32 to vector<8x1xi32>
    %59 = arith.addi %57, %58 : vector<8x1xi32>
    %c8_i32_19 = arith.constant 8 : i32
    %60 = vector.broadcast %c8_i32_19 : i32 to vector<8x1xi32>
    %61 = arith.cmpi slt, %59, %60 : vector<8x1xi32>
    %cst_20 = arith.constant 0.000000e+00 : f32
    %62 = vector.broadcast %cst_20 : f32 to vector<8x1xf32>
    %63 = arith.select %61, %55, %62 : vector<8x1xi1>, vector<8x1xf32>
    %64 = vector.shape_cast %63 : vector<8x1xf32> to vector<1x8x1xf32>
    %cst_21 = arith.constant dense<0.000000e+00> : vector<1xf32>
    %65 = vector.multi_reduction <add>, %64, %cst_21 [1, 2] : vector<1x8x1xf32> to vector<1xf32>
    %66 = vector.shape_cast %65 : vector<1xf32> to vector<1x1x1xf32>
    %67 = vector.extract %66[0, 0, 0] : f32 from vector<1x1x1xf32>
    %68 = arith.addf %40, %67 : f32
    %69 = vector.extract_strided_slice %4 {offsets = [0, 64], sizes = [8, 32], strides = [1, 1]} : vector<8x128xf32> to vector<8x32xf32>
    %70 = vector.extract_strided_slice %8 {offsets = [0, 64], sizes = [8, 32], strides = [1, 1]} : vector<8x128xf32> to vector<8x32xf32>
    %71 = arith.mulf %69, %69 : vector<8x32xf32>
    %cst_22 = arith.constant dense<0.000000e+00> : vector<8xf32>
    %72 = vector.multi_reduction <add>, %71, %cst_22 [1] : vector<8x32xf32> to vector<8xf32>
    %73 = vector.shape_cast %72 : vector<8xf32> to vector<8x1xf32>
    %74 = math.sqrt %73 : vector<8x1xf32>
    %75 = arith.mulf %70, %70 : vector<8x32xf32>
    %cst_23 = arith.constant dense<0.000000e+00> : vector<8xf32>
    %76 = vector.multi_reduction <add>, %75, %cst_23 [1] : vector<8x32xf32> to vector<8xf32>
    %77 = vector.shape_cast %76 : vector<8xf32> to vector<8x1xf32>
    %78 = math.sqrt %77 : vector<8x1xf32>
    %79 = arith.subf %74, %78 : vector<8x1xf32>
    %cst_24 = arith.constant 1.000000e+00 : f32
    %80 = vector.broadcast %cst_24 : f32 to vector<8x1xf32>
    %81 = arith.addf %79, %80 : vector<8x1xf32>
    %cst_25 = arith.constant 0.000000e+00 : f32
    %82 = vector.broadcast %cst_25 : f32 to vector<8x1xf32>
    %83 = arith.maximumf %81, %82 : vector<8x1xf32>
    %c4_i32_26 = arith.constant 4 : i32
    %84 = vector.broadcast %c4_i32_26 : i32 to vector<8x1xi32>
    %85 = arith.muli %12, %84 : vector<8x1xi32>
    %c2_i32 = arith.constant 2 : i32
    %86 = vector.broadcast %c2_i32 : i32 to vector<8x1xi32>
    %87 = arith.addi %85, %86 : vector<8x1xi32>
    %c8_i32_27 = arith.constant 8 : i32
    %88 = vector.broadcast %c8_i32_27 : i32 to vector<8x1xi32>
    %89 = arith.cmpi slt, %87, %88 : vector<8x1xi32>
    %cst_28 = arith.constant 0.000000e+00 : f32
    %90 = vector.broadcast %cst_28 : f32 to vector<8x1xf32>
    %91 = arith.select %89, %83, %90 : vector<8x1xi1>, vector<8x1xf32>
    %92 = vector.shape_cast %91 : vector<8x1xf32> to vector<1x8x1xf32>
    %cst_29 = arith.constant dense<0.000000e+00> : vector<1xf32>
    %93 = vector.multi_reduction <add>, %92, %cst_29 [1, 2] : vector<1x8x1xf32> to vector<1xf32>
    %94 = vector.shape_cast %93 : vector<1xf32> to vector<1x1x1xf32>
    %95 = vector.extract %94[0, 0, 0] : f32 from vector<1x1x1xf32>
    %96 = arith.addf %68, %95 : f32
    %97 = vector.extract_strided_slice %4 {offsets = [0, 96], sizes = [8, 32], strides = [1, 1]} : vector<8x128xf32> to vector<8x32xf32>
    %98 = vector.extract_strided_slice %8 {offsets = [0, 96], sizes = [8, 32], strides = [1, 1]} : vector<8x128xf32> to vector<8x32xf32>
    %99 = arith.mulf %97, %97 : vector<8x32xf32>
    %cst_30 = arith.constant dense<0.000000e+00> : vector<8xf32>
    %100 = vector.multi_reduction <add>, %99, %cst_30 [1] : vector<8x32xf32> to vector<8xf32>
    %101 = vector.shape_cast %100 : vector<8xf32> to vector<8x1xf32>
    %102 = math.sqrt %101 : vector<8x1xf32>
    %103 = arith.mulf %98, %98 : vector<8x32xf32>
    %cst_31 = arith.constant dense<0.000000e+00> : vector<8xf32>
    %104 = vector.multi_reduction <add>, %103, %cst_31 [1] : vector<8x32xf32> to vector<8xf32>
    %105 = vector.shape_cast %104 : vector<8xf32> to vector<8x1xf32>
    %106 = math.sqrt %105 : vector<8x1xf32>
    %107 = arith.subf %102, %106 : vector<8x1xf32>
    %cst_32 = arith.constant 1.000000e+00 : f32
    %108 = vector.broadcast %cst_32 : f32 to vector<8x1xf32>
    %109 = arith.addf %107, %108 : vector<8x1xf32>
    %cst_33 = arith.constant 0.000000e+00 : f32
    %110 = vector.broadcast %cst_33 : f32 to vector<8x1xf32>
    %111 = arith.maximumf %109, %110 : vector<8x1xf32>
    %c4_i32_34 = arith.constant 4 : i32
    %112 = vector.broadcast %c4_i32_34 : i32 to vector<8x1xi32>
    %113 = arith.muli %12, %112 : vector<8x1xi32>
    %c3_i32 = arith.constant 3 : i32
    %114 = vector.broadcast %c3_i32 : i32 to vector<8x1xi32>
    %115 = arith.addi %113, %114 : vector<8x1xi32>
    %c8_i32_35 = arith.constant 8 : i32
    %116 = vector.broadcast %c8_i32_35 : i32 to vector<8x1xi32>
    %117 = arith.cmpi slt, %115, %116 : vector<8x1xi32>
    %cst_36 = arith.constant 0.000000e+00 : f32
    %118 = vector.broadcast %cst_36 : f32 to vector<8x1xf32>
    %119 = arith.select %117, %111, %118 : vector<8x1xi1>, vector<8x1xf32>
    %120 = vector.shape_cast %119 : vector<8x1xf32> to vector<1x8x1xf32>
    %cst_37 = arith.constant dense<0.000000e+00> : vector<1xf32>
    %121 = vector.multi_reduction <add>, %120, %cst_37 [1, 2] : vector<1x8x1xf32> to vector<1xf32>
    %122 = vector.shape_cast %121 : vector<1xf32> to vector<1x1x1xf32>
    %123 = vector.extract %122[0, 0, 0] : f32 from vector<1x1x1xf32>
    %124 = arith.addf %96, %123 : f32
    %125 = vector.broadcast %124 : f32 to vector<1x1x128xf32>
    %c0_38 = arith.constant 0 : index
    %c0_39 = arith.constant 0 : index
    %c0_40 = arith.constant 0 : index
    %126 = vector.load %arg4[%c0_38, %c0_39, %c0_40] : memref<1x1x128xf32, #tpu.memory_space<vmem>>, vector<1x1x128xf32>
    tpu.vector_store %arg4[%c0_38, %c0_39, %c0_40], %125 {strides = array<i32>} : memref<1x1x128xf32, #tpu.memory_space<vmem>>, vector<1x1x128xf32>,
    return
  }
  func.func @transform_0(%arg0: i32) -> (i32, i32) {
    %c0_i32 = arith.constant 0 : i32
    %c0_i32_0 = arith.constant 0 : i32
    return %arg0, %c0_i32 : i32, i32
  }
  func.func @transform_1(%arg0: i32) -> (i32, i32) {
    %c0_i32 = arith.constant 0 : i32
    %c0_i32_0 = arith.constant 0 : i32
    return %arg0, %c0_i32 : i32, i32
  }
  func.func @transform_2(%arg0: i32) -> (i32, i32) {
    %c0_i32 = arith.constant 0 : i32
    %c0_i32_0 = arith.constant 0 : i32
    return %arg0, %c0_i32 : i32, i32
  }
  func.func @transform_3(%arg0: i32) -> (i32, i32, i32) {
    %c0_i32 = arith.constant 0 : i32
    %c0_i32_0 = arith.constant 0 : i32
    %c0_i32_1 = arith.constant 0 : i32
    return %arg0, %c0_i32, %c0_i32_0 : i32, i32, i32
  }
}

</mosaic_0001>

<bundles_post_ra>
// kernel: tpu_custom_call.1
= control target key start
LH: loop header
LB: loop body
LE: loop exit
PB: predicated region body
PF: predicated region fallthrough
CT: control target
= control target key end

     0   :  { %8 = vsyncpa [#allocation3], 0  ;;  %s566_s0 = inlined_call_operand.hbm [shape: f32[2,128], index: 0, kind: input, shape index: {}]   ;;  %s567_s1 = inlined_call_operand.hbm [shape: f32[2,128], index: 1, kind: input, shape index: {}]   ;;  %s568_s2 = inlined_call_operand.hbm [shape: f32[2,128], index: 2, kind: input, shape index: {}]   ;;  %s569_s3 = inlined_call_operand.hbm [shape: f32[1,1,128], index: 3, kind: output, shape index: {}]  }
   0x1   :  { %9 = vsyncpa [#allocation6], 0 }
   0x2   :  { %10 = vsyncpa [#allocation4], 0 }
   0x3   :  { %14 = vsyncadd [#allocation3], 96  ;;  %s15_s14 = sshll.u32 %s566_s0, 4  ;;  %s440_s15 = smov [#allocation2]   ;;  %s16_s14 = int_to_ptr.hbm [resolvable:$true] %s15_s14 }
   0x4   :  { %s17_s16 = sshll.u32 %s440_s15, 4  ;;  %s441_s17 = smov 32   ;;  %s18_s16 = int_to_ptr.vmem [resolvable:$true] %s17_s16 }
   0x5   :  { %s442_s18 = smov 2  }
   0x6   :  { %23 = dma.hbm_to_vmem [thread:$0]  %s16_s14, 32, %s18_s16, [#allocation3], %s441_s17, %s441_s17, %s442_s18  }
   0x7   :  { %27 = vsyncadd [#allocation6], 96  ;;  %s28_s21 = sshll.u32 %s567_s1, 4  ;;  %s443_s22 = smov [#allocation5]   ;;  %s29_s21 = int_to_ptr.hbm [resolvable:$true] %s28_s21 }
   0x8   :  { %s30_s23 = sshll.u32 %s443_s22, 4  ;;  %s31_s23 = int_to_ptr.vmem [resolvable:$true] %s30_s23 }
   0x9   :  { %36 = dma.hbm_to_vmem [thread:$0]  %s29_s21, 32, %s31_s23, [#allocation6], %s441_s17, %s441_s17, %s442_s18  }
   0xa   :  { %40 = vsyncadd [#allocation6], 96  ;;  %s41_s25 = sshll.u32 %s568_s2, 4  ;;  %s444_s26 = smov [#allocation7]   ;;  %s42_s25 = int_to_ptr.hbm [resolvable:$true] %s41_s25 }
   0xb   :  { %s43_s27 = sshll.u32 %s444_s26, 4  ;;  %s44_s27 = int_to_ptr.vmem [resolvable:$true] %s43_s27 }
   0xc   :  { %49 = dma.hbm_to_vmem [thread:$0]  %s42_s25, 32, %s44_s27, [#allocation6], %s441_s17, %s441_s17, %s442_s18  }
   0xd   :  { %434 = dma.done.wait [#allocation3], 128  }
   0xe   :  { %435 = vsyncadd [#allocation3], 4294967168 }
   0xf   :  { %436 = dma.done.wait [#allocation6], 256  }
  0x10   :  { %437 = vsyncadd [#allocation6], 4294967040  ;;  %v62_v0 = vld [vmem:[#allocation2] sm:$0xff]  ;;  %v63_v1 = vld [vmem:[#allocation5] sm:$0xff]  ;;  %s445_s1 = smov 64   ;;  %s446_s2 = smov 96   ;;  %v69_v43 = vlaneseq }
  0x11   :  { %v66_v2 = vld [vmem:[#allocation7] sm:$0xff]  ;;  %v64_v3 = vsub.f32 %v62_v0, %v63_v1  ;;  %vm75_vm0 = vcmask 261120   ;;  %vm113_vm6 = vcmask 7168   ;;  %s295_s7 = sshll.u32 %s569_s3, 4  ;;  %s447_s9 = smov [#allocation8]   ;;  %s296_s7 = int_to_ptr.hbm [resolvable:$true] %s295_s7 }
  0x12   :  { %v67_v5 = vsub.f32 %v62_v0, %v66_v2  ;;  %v70_v47 = vshrl.u32 %v69_v43, 7  ;;  %s293_s10 = sshll.u32 %s447_s9, 4  ;;  %s294_s10 = int_to_ptr.vmem [resolvable:$true] %s293_s10 }
  0x13   :  { %v65_v4 = vadd.f32 1e-06, %v64_v3 }
  0x14   :  { %v68_v7 = vadd.f32 1e-06, %v67_v5  ;;  %v493_v49 = vmul.u32 4, %v70_v47 }
  0x15   :  { %v74_v6 = vmul.f32 %v65_v4, %v65_v4 }
  0x16   :  { %v91_v8 = vmul.f32 %v68_v7, %v68_v7  ;;  %vm111_vm5 = vcmp.lt.s32.totalorder %v493_v49, 8 }
  0x17   :  { %180 = vrot.lane.b32.xlu1 %v74_v6, %s445_s1  ;;  %126 = vrot.lane.b32.xlu0 %v74_v6, %s446_s2  ;;  %v76_v10 = vsel %vm75_vm0, %v74_v6, 0.0 }
  0x18   :  { %233 = vrot.lane.b32.xlu2 %v74_v6, %s441_s17  ;;  %v92_v9 = vsel %vm75_vm0, %v91_v8, 0.0 }
  0x1f   :  { %198 = vrot.lane.b32.xlu1 %v91_v8, %s445_s1  ;;  %145 = vrot.lane.b32.xlu0 %v91_v8, %s446_s2 }
  0x20   :  { %251 = vrot.lane.b32.xlu2 %v91_v8, %s441_s17 }
  0x49   :  { %93 = vadd.xlane.f32.xlu1 %v92_v9  ;;  %77 = vadd.xlane.f32.xlu0 %v76_v10 }
  0x72   :  { %v234_v11 = vpop.permute.xlu2 %233 }
  0x73   :  { %v236_v22 = vsel %vm75_vm0, %v234_v11, 0.0 }
  0x7a   :  { %v252_v16 = vpop.permute.xlu2 %251 }
  0x7b   :  { %v254_v19 = vsel %vm75_vm0, %v252_v16, 0.0 }
  0x89   :  { %v181_v12 = vpop.permute.xlu1 %180  ;;  %v127_v13 = vpop.permute.xlu0 %126 }
  0x8a   :  { %v129_v14 = vsel %vm75_vm0, %v127_v13, 0.0  ;;  %v183_v15 = vsel %vm75_vm0, %v181_v12, 0.0 }
  0x8b   :  { %130 = vadd.xlane.f32.xlu2 %v129_v14  ;;  %184 = vadd.xlane.f32.xlu0 %v183_v15 }
  0x91   :  { %v199_v17 = vpop.permute.xlu1 %198  ;;  %v146_v18 = vpop.permute.xlu0 %145 }
  0x92   :  { %v201_v20 = vsel %vm75_vm0, %v199_v17, 0.0  ;;  %v148_v21 = vsel %vm75_vm0, %v146_v18, 0.0 }
  0x93   :  { %202 = vadd.xlane.f32.xlu1 %v201_v20  ;;  %149 = vadd.xlane.f32.xlu2 %v148_v21 }
  0x94   :  { %255 = vadd.xlane.f32.xlu0 %v254_v19 }
  0x9b   :  { %237 = vadd.xlane.f32.xlu2 %v236_v22 }
  0xbc   :  { %v94_v23 = vpop.xlane.xlu1 %93  ;;  %v78_v24 = vpop.xlane.xlu0 %77 }
  0xbd   :  { %322 = vrsqrt.f32 %v94_v23  ;;  %vm86_vm1 = vcmp.eq.f32.partialorder %v78_v24, inf  ;;  %v89_v39 = vand.u32 2147483648, %v78_v24  ;;  %vm102_vm2 = vcmp.eq.f32.partialorder %v94_v23, inf }
  0xbe   :  { %324 = vrsqrt.f32 %v78_v24  ;;  %v105_v40 = vand.u32 2147483648, %v94_v23  ;;  %vm88_vm3 = vcmp.eq.f32.partialorder %v78_v24, 0.0  ;;  %vm104_vm4 = vcmp.eq.f32.partialorder %v94_v23, 0.0 }
  0xc3   :  { %v323_v25 = vpop.eup %322 }
  0xc4   :  { %v325_v26 = vpop.eup %324  ;;  %v96_v27 = vmul.f32 %v323_v25, %v94_v23 }
  0xc5   :  { %v80_v28 = vmul.f32 %v325_v26, %v78_v24 }
  0xc6   :  { %v97_v30 = vmul.f32 %v323_v25, %v96_v27  ;;  %v166_v27 = vadd.s32 1, %v493_v49 }
  0xc7   :  { %v81_v29 = vmul.f32 %v325_v26, %v80_v28 }
  0xc8   :  { %v98_v32 = vmul.f32 0.5, %v97_v30  ;;  %vm167_vm15 = vcmp.lt.s32.totalorder %v166_v27, 8 }
  0xc9   :  { %v82_v31 = vmul.f32 0.5, %v81_v29 }
  0xca   :  { %v99_v34 = vsub.f32 1.5, %v98_v32  ;;  %v219_v32 = vadd.s32 2, %v493_v49 }
  0xcb   :  { %v83_v33 = vsub.f32 1.5, %v82_v31 }
  0xcc   :  { %v100_v36 = vmul.f32 %v323_v25, %v99_v34  ;;  %vm220_vm0 = vcmp.lt.s32.totalorder %v219_v32, 8 }
  0xcd   :  { %v84_v35 = vmul.f32 %v325_v26, %v83_v33 }
  0xce   :  { %v101_v38 = vmul.f32 %v100_v36, %v94_v23 }
  0xcf   :  { %v85_v37 = vmul.f32 %v84_v35, %v78_v24 }
  0xd0   :  { %v103_v42 = vsel %vm102_vm2, %v94_v23, %v101_v38 }
  0xd1   :  { %v87_v41 = vsel %vm86_vm1, %v78_v24, %v85_v37  ;;  %v106_v45 = vsel %vm104_vm4, %v105_v40, %v103_v42 }
  0xd2   :  { %v90_v44 = vsel %vm88_vm3, %v89_v39, %v87_v41 }
  0xd3   :  { %v107_v46 = vsub.f32 %v90_v44, %v106_v45 }
  0xd5   :  { %v108_v48 = vadd.f32 1.0, %v107_v46 }
  0xd7   :  { %v109_v50 = vmax.f32 %v108_v48, 0.0 }
  0xd9   :  { %v112_v51 = vsel %vm111_vm5, %v109_v50, 0.0 }
  0xda   :  { %v114_v52 = vsel %vm113_vm6, %v112_v51, 0.0 }
  0xdb   :  { %115 = vadd.xlane.f32.xlu1 %v114_v52 }
  0xfe   :  { %v497_v53 = vpop.xlane.xlu2 %130  ;;  %v499_v54 = vpop.xlane.xlu0 %184 }
  0xff   :  { %326 = vrsqrt.f32 %v497_v53  ;;  %vm139_vm7 = vcmp.eq.f32.partialorder %v497_v53, inf  ;;  %vm141_vm8 = vcmp.eq.f32.partialorder %v497_v53, 0.0  ;;  %v142_v19 = vand.u32 2147483648, %v497_v53 }
 0x100   :  { %328 = vrsqrt.f32 %v499_v54  ;;  %vm193_vm9 = vcmp.eq.f32.partialorder %v499_v54, inf  ;;  %vm195_vm10 = vcmp.eq.f32.partialorder %v499_v54, 0.0  ;;  %v196_v25 = vand.u32 2147483648, %v499_v54 }
 0x105   :  { %v327_v55 = vpop.eup %326 }
 0x106   :  { %v329_v56 = vpop.eup %328  ;;  %v133_v57 = vmul.f32 %v327_v55, %v497_v53  ;;  %v504_v58 = vpop.xlane.xlu1 %202 }
 0x107   :  { %v506_v59 = vpop.xlane.xlu2 %149  ;;  %v187_v60 = vmul.f32 %v329_v56, %v499_v54  ;;  %330 = vrsqrt.f32 %v504_v58  ;;  %v510_v61 = vpop.xlane.xlu0 %255  ;;  %vm211_vm13 = vcmp.eq.f32.partialorder %v504_v58, inf  ;;  %v214_v38 = vand.u32 2147483648, %v504_v58 }
 0x108   :  { %332 = vrsqrt.f32 %v506_v59  ;;  %v134_v62 = vmul.f32 %v327_v55, %v133_v57  ;;  %vm158_vm11 = vcmp.eq.f32.partialorder %v506_v59, inf  ;;  %vm160_vm12 = vcmp.eq.f32.partialorder %v506_v59, 0.0 }
 0x109   :  { %334 = vrsqrt.f32 %v510_v61  ;;  %v188_v63 = vmul.f32 %v329_v56, %v187_v60  ;;  %v161_v39 = vand.u32 2147483648, %v506_v59  ;;  %vm213_vm14 = vcmp.eq.f32.partialorder %v504_v58, 0.0 }
 0x10a   :  { %v135_v0 = vmul.f32 0.5, %v134_v62  ;;  %vm264_vm1 = vcmp.eq.f32.partialorder %v510_v61, inf  ;;  %vm266_vm2 = vcmp.eq.f32.partialorder %v510_v61, 0.0  ;;  %v267_v60 = vand.u32 2147483648, %v510_v61 }
 0x10b   :  { %v189_v1 = vmul.f32 0.5, %v188_v63 }
 0x10c   :  { %v136_v2 = vsub.f32 1.5, %v135_v0  ;;  %v272_v0 = vadd.s32 3, %v493_v49 }
 0x10d   :  { %v331_v3 = vpop.eup %330  ;;  %v190_v4 = vsub.f32 1.5, %v189_v1 }
 0x10e   :  { %v333_v5 = vpop.eup %332  ;;  %v205_v6 = vmul.f32 %v331_v3, %v504_v58  ;;  %v137_v10 = vmul.f32 %v327_v55, %v136_v2  ;;  %vm273_vm5 = vcmp.lt.s32.totalorder %v272_v0, 8 }
 0x10f   :  { %v515_v7 = vpop.xlane.xlu2 %237  ;;  %v335_v8 = vpop.eup %334  ;;  %v152_v9 = vmul.f32 %v333_v5, %v506_v59  ;;  %v191_v12 = vmul.f32 %v329_v56, %v190_v4 }
 0x110   :  { %336 = vrsqrt.f32 %v515_v7  ;;  %v258_v11 = vmul.f32 %v335_v8, %v510_v61  ;;  %v206_v13 = vmul.f32 %v331_v3, %v205_v6  ;;  %v138_v17 = vmul.f32 %v137_v10, %v497_v53 }
 0x111   :  { %v153_v14 = vmul.f32 %v333_v5, %v152_v9  ;;  %v192_v20 = vmul.f32 %v191_v12, %v499_v54  ;;  %vm246_vm3 = vcmp.eq.f32.partialorder %v515_v7, inf  ;;  %vm248_vm4 = vcmp.eq.f32.partialorder %v515_v7, 0.0 }
 0x112   :  { %v207_v15 = vmul.f32 0.5, %v206_v13  ;;  %v259_v16 = vmul.f32 %v335_v8, %v258_v11  ;;  %v140_v30 = vsel %vm139_vm7, %v497_v53, %v138_v17 }
 0x113   :  { %v154_v18 = vmul.f32 0.5, %v153_v14  ;;  %v194_v33 = vsel %vm193_vm9, %v499_v54, %v192_v20  ;;  %v143_v42 = vsel %vm141_vm8, %v142_v19, %v140_v30 }
 0x114   :  { %v208_v21 = vsub.f32 1.5, %v207_v15  ;;  %v260_v22 = vmul.f32 0.5, %v259_v16  ;;  %v197_v44 = vsel %vm195_vm10, %v196_v25, %v194_v33 }
 0x115   :  { %v155_v24 = vsub.f32 1.5, %v154_v18 }
 0x116   :  { %v337_v23 = vpop.eup %336  ;;  %v209_v28 = vmul.f32 %v331_v3, %v208_v21  ;;  %v261_v29 = vsub.f32 1.5, %v260_v22 }
 0x117   :  { %v240_v26 = vmul.f32 %v337_v23, %v515_v7  ;;  %v156_v31 = vmul.f32 %v333_v5, %v155_v24 }
 0x118   :  { %v210_v34 = vmul.f32 %v209_v28, %v504_v58  ;;  %v262_v36 = vmul.f32 %v335_v8, %v261_v29 }
 0x119   :  { %v241_v35 = vmul.f32 %v337_v23, %v240_v26  ;;  %v157_v37 = vmul.f32 %v156_v31, %v506_v59 }
 0x11a   :  { %v212_v40 = vsel %vm211_vm13, %v504_v58, %v210_v34  ;;  %v263_v50 = vmul.f32 %v262_v36, %v510_v61 }
 0x11b   :  { %v242_v41 = vmul.f32 0.5, %v241_v35  ;;  %v159_v43 = vsel %vm158_vm11, %v506_v59, %v157_v37  ;;  %v215_v45 = vsel %vm213_vm14, %v214_v38, %v212_v40  ;;  %v249_v59 = vand.u32 2147483648, %v515_v7 }
 0x11c   :  { %v162_v46 = vsel %vm160_vm12, %v161_v39, %v159_v43  ;;  %v216_v47 = vsub.f32 %v197_v44, %v215_v45  ;;  %v265_v54 = vsel %vm264_vm1, %v510_v61, %v263_v50 }
 0x11d   :  { %v243_v48 = vsub.f32 1.5, %v242_v41  ;;  %v163_v51 = vsub.f32 %v143_v42, %v162_v46  ;;  %v268_v4 = vsel %vm266_vm2, %v267_v60, %v265_v54 }
 0x11e   :  { %v217_v52 = vadd.f32 1.0, %v216_v47 }
 0x11f   :  { %v244_v55 = vmul.f32 %v337_v23, %v243_v48  ;;  %v164_v56 = vadd.f32 1.0, %v163_v51 }
 0x120   :  { %v218_v53 = vmax.f32 %v217_v52, 0.0 }
 0x121   :  { %v245_v57 = vmul.f32 %v244_v55, %v515_v7  ;;  %v165_v58 = vmax.f32 %v164_v56, 0.0 }
 0x122   :  { %v221_v62 = vsel %vm220_vm0, %v218_v53, 0.0 }
 0x123   :  { %v247_v63 = vsel %vm246_vm3, %v515_v7, %v245_v57  ;;  %v168_v1 = vsel %vm167_vm15, %v165_v58, 0.0  ;;  %v222_v2 = vsel %vm113_vm6, %v221_v62, 0.0 }
 0x124   :  { %v250_v3 = vsel %vm248_vm4, %v249_v59, %v247_v63  ;;  %v169_v5 = vsel %vm113_vm6, %v168_v1, 0.0  ;;  %223 = vadd.xlane.f32.xlu0 %v222_v2 }
 0x125   :  { %v269_v6 = vsub.f32 %v250_v3, %v268_v4  ;;  %170 = vadd.xlane.f32.xlu2 %v169_v5 }
 0x127   :  { %v270_v8 = vadd.f32 1.0, %v269_v6 }
 0x129   :  { %v271_v61 = vmax.f32 %v270_v8, 0.0 }
 0x12b   :  { %v274_v9 = vsel %vm273_vm5, %v271_v61, 0.0 }
 0x12c   :  { %v275_v10 = vsel %vm113_vm6, %v274_v9, 0.0 }
 0x12d   :  { %276 = vadd.xlane.f32.xlu1 %v275_v10 }
 0x14e   :  { %v116_v7 = vpop.xlane.xlu1 %115 }
 0x14f   :  { %v117_v11 = vrot.slane %v116_v7, 4 }
 0x151   :  { %v118_v49 = vadd.f32 %v117_v11, %v116_v7 }
 0x153   :  { %v119_v12 = vrot.slane %v118_v49, 2 }
 0x155   :  { %v120_v13 = vadd.f32 %v119_v12, %v118_v49 }
 0x157   :  { %v121_v14 = vrot.slane %v120_v13, 1 }
 0x159   :  { %v122_v15 = vadd.f32 %v121_v14, %v120_v13 }
 0x15b   :  { %306 = vpush %v122_v15 }
 0x18c   :  { %s307_s28 = spop %306 }
 0x197   :  { %v224_v16 = vpop.xlane.xlu0 %223 }
 0x198   :  { %v171_v17 = vpop.xlane.xlu2 %170  ;;  %v225_v18 = vrot.slane %v224_v16, 4 }
 0x199   :  { %v172_v19 = vrot.slane %v171_v17, 4 }
 0x19a   :  { %v226_v20 = vadd.f32 %v225_v18, %v224_v16 }
 0x19b   :  { %v173_v21 = vadd.f32 %v172_v19, %v171_v17 }
 0x19c   :  { %v227_v22 = vrot.slane %v226_v20, 2 }
 0x19d   :  { %v174_v23 = vrot.slane %v173_v21, 2 }
 0x19e   :  { %v228_v24 = vadd.f32 %v227_v22, %v226_v20 }
 0x19f   :  { %v175_v25 = vadd.f32 %v174_v23, %v173_v21 }
 0x1a0   :  { %v277_v26 = vpop.xlane.xlu1 %276  ;;  %v229_v28 = vrot.slane %v228_v24, 1 }
 0x1a1   :  { %v278_v27 = vrot.slane %v277_v26, 4  ;;  %v176_v29 = vrot.slane %v175_v25, 1 }
 0x1a2   :  { %v230_v31 = vadd.f32 %v229_v28, %v228_v24 }
 0x1a3   :  { %v279_v30 = vadd.f32 %v278_v27, %v277_v26  ;;  %v177_v32 = vadd.f32 %v176_v29, %v175_v25 }
 0x1a5   :  { %v280_v33 = vrot.slane %v279_v30, 2  ;;  %308 = vpush %v177_v32 }
 0x1a6   :  { %310 = vpush %v230_v31 }
 0x1a7   :  { %v281_v34 = vadd.f32 %v280_v33, %v279_v30 }
 0x1a9   :  { %v282_v35 = vrot.slane %v281_v34, 1 }
 0x1ab   :  { %v283_v36 = vadd.f32 %v282_v35, %v281_v34 }
 0x1ad   :  { %312 = vpush %v283_v36 }
 0x1d6   :  { %s309_s29 = spop %308 }
 0x1d7   :  { %s179_s30 = sadd.f32 %s309_s29, %s307_s28  ;;  %s311_s4 = spop %310 }
 0x1d9   :  { %s232_s8 = sadd.f32 %s311_s4, %s179_s30 }
 0x1de   :  { %s313_s11 = spop %312 }
 0x1df   :  { %s285_s12 = sadd.f32 %s313_s11, %s232_s8 }
 0x1e1   :  { %v286_v37 = vstv %s285_s12 }
 0x1e2   :  { %287 = vst [vmem:[#allocation8] sm:$0x1] %v286_v37 }
 0x1e3   :  { %298 = dma.vmem_to_hbm [thread:$0]  %s294_s10, 16, %s296_s7, [#allocation4]  }
 0x1e4   :  { %438 = dma.done.wait [#allocation4], 16  }
 0x1e5   :  { %439 = vsyncadd [#allocation4], 4294967280 }
 0x1e6   :  { %303 = vsyncpa [#allocation3], 1 }
 0x1e7   :  { %304 = vsyncpa [#allocation6], 1 }
 0x1e8   :  { %305 = vsyncpa [#allocation4], 1 }

</bundles_post_ra>
